<compile_context>
chip_gen: v6e
topology: v6e:2x2x1
jax: 0.10.0
libtpu: 0.0.40
codegen_flags: <defaults>
</compile_context>

<pallas_src>
import jax
import jax.numpy as jnp
from jax.experimental import pallas as pl
from jax.experimental.pallas import tpu as pltpu


def _round_up(x, m):
    return ((x + m - 1) // m) * m


def _mlp_kernel(x_ref, w1_ref, w2_ref, w3_ref, b12_ref, b3_ref, o_ref):
    # fc1 + ReLU  (MXU matmul, f32 accumulation; bias row broadcasts over sublanes)
    h1 = jnp.dot(x_ref[...], w1_ref[...], preferred_element_type=jnp.float32)
    h1 = jnp.maximum(h1 + b12_ref[0:1, :], 0.0)
    # fc2 + ReLU
    h2 = jnp.dot(h1, w2_ref[...], preferred_element_type=jnp.float32)
    h2 = jnp.maximum(h2 + b12_ref[1:2, :], 0.0)
    # fc3: output dim is 1 -> skip the N=1 MXU matmul, use the idle VPU/XLU slots:
    # broadcast-multiply by the (1, hidden) w3 row, then reduce over lanes.
    out = jnp.sum(h2 * w3_ref[...], axis=-1, keepdims=True) + b3_ref[...]
    o_ref[...] = out.astype(o_ref.dtype)


def simple_value_network_forward(x, params, *, block_b=512):
    """x: (B, input_size) f32. Returns (B,) f32 — matches the torch forward()."""
    w1, w2, w3_row, b12, b3 = params
    B, in_dim = x.shape
    hidden = w1.shape[1]

    # Batch tile: multiple of 8 sublanes (aligned (TB, 1) stores), capped at block_b
    # rows so per-step overhead (~0.35 us) is amortized while staying tiny in VMEM.
    tb = min(block_b, _round_up(B, 8))
    b_pad = _round_up(B, tb)
    if b_pad != B:
        x = jnp.pad(x, ((0, b_pad - B), (0, 0)))

    out = pl.pallas_call(
        _mlp_kernel,
        out_shape=jax.ShapeDtypeStruct((b_pad, 1), jnp.float32),
        grid=(b_pad // tb,),
        in_specs=[
            # Activations: one (TB, input_size) tile per grid step.
            pl.BlockSpec((tb, in_dim), lambda i: (i, 0)),
            # Weights / biases: constant block index -> fetched once, stay resident.
            pl.BlockSpec((in_dim, hidden), lambda i: (0, 0)),   # w1 (in, hidden)
            pl.BlockSpec((hidden, hidden), lambda i: (0, 0)),   # w2 (hidden, hidden)
            pl.BlockSpec((1, hidden), lambda i: (0, 0)),        # w3 row (1, hidden)
            pl.BlockSpec((2, hidden), lambda i: (0, 0)),        # b1/b2 packed (2, hidden)
            pl.BlockSpec((1, 1), lambda i: (0, 0)),             # b3 scalar (1, 1)
        ],
        out_specs=pl.BlockSpec((tb, 1), lambda i: (i, 0)),
        compiler_params=pltpu.CompilerParams(
            dimension_semantics=("parallel",),
        ),
    )(x, w1, w2, w3_row, b12, b3)

    # .squeeze(-1) from the torch module + drop batch padding (wrapper glue).
    return out[:B, 0]


def init_params(key, input_size, hidden_size):
    """torch.nn.Linear-style init (U(-1/sqrt(fan_in), +bound)), repacked for the kernel:
    weights stored (in, out) so the kernel computes x @ W; w3 kept as a (1, hidden) row
    (fc3 is a VPU reduce, not a matmul); b1/b2 packed into a single (2, hidden) block."""
    def linear(k, fan_in, fan_out):
        kw, kb = jax.random.split(k)
        bound = 1.0 / jnp.sqrt(jnp.float32(fan_in))
        w = jax.random.uniform(kw, (fan_in, fan_out), jnp.float32, -bound, bound)
        b = jax.random.uniform(kb, (1, fan_out), jnp.float32, -bound, bound)
        return w, b

    k1, k2, k3 = jax.random.split(key, 3)
    w1, b1 = linear(k1, input_size, hidden_size)
    w2, b2 = linear(k2, hidden_size, hidden_size)
    w3, b3 = linear(k3, hidden_size, 1)            # w3: (hidden, 1), b3: (1, 1)
    w3_row = jnp.transpose(w3)                      # (1, hidden)
    b12 = jnp.concatenate([b1, b2], axis=0)         # (2, hidden)
    return (w1, w2, w3_row, b12, b3)


def _reference(x, params):
    w1, w2, w3_row, b12, b3 = params
    h = jnp.maximum(x @ w1 + b12[0:1, :], 0.0)
    h = jnp.maximum(h @ w2 + b12[1:2, :], 0.0)
    return (h @ jnp.transpose(w3_row) + b3)[:, 0]


if __name__ == "__main__":
    key = jax.random.PRNGKey(0)
    k_params, k_x1, k_x2 = jax.random.split(key, 3)

    input_size, hidden_size = 16, 32
    params = init_params(k_params, input_size, hidden_size)

    # Small shape consistent with the module.
    batch = 8
    x_small = jax.random.normal(k_x1, (batch, input_size), jnp.float32)
    y_small = jax.block_until_ready(simple_value_network_forward(x_small, params))
    assert y_small.shape == (batch,)
    assert jnp.allclose(y_small, _reference(x_small, params), atol=1e-5, rtol=1e-5)

    # Larger, non-multiple-of-tile batch: exercises padding + multi-step parallel grid.
    big_batch = 1200
    x_big = jax.random.normal(k_x2, (big_batch, input_size), jnp.float32)
    y_big = jax.block_until_ready(simple_value_network_forward(x_big, params))
    assert y_big.shape == (big_batch,)
    assert jnp.allclose(y_big, _reference(x_big, params), atol=1e-5, rtol=1e-5)

    print("KERNEL_OK")
</pallas_src>

<mosaic_0001>
module attributes {stable_mosaic.version = 11 : i64} {
  func.func @_mlp_kernel(%arg0: i32, %arg1: memref<8x16xf32, #tpu.memory_space<vmem>>, %arg2: memref<16x32xf32, #tpu.memory_space<vmem>>, %arg3: memref<32x32xf32, #tpu.memory_space<vmem>>, %arg4: memref<1x32xf32, #tpu.memory_space<vmem>>, %arg5: memref<2x32xf32, #tpu.memory_space<vmem>>, %arg6: memref<1x1xf32, #tpu.memory_space<vmem>>, %arg7: memref<8x1xf32, #tpu.memory_space<vmem>>) attributes {dimension_semantics = [#tpu.dimension_semantics<parallel>], iteration_bounds = array<i64: 1>, scalar_prefetch = 0 : i64, scratch_operands = 0 : i64, tpu.core_type = #tpu.core_type<tc>, window_params = [{transform_indices = @transform_0, window_bounds = array<i64: 8, 16>}, {pipeline_mode = #tpu.pipeline_mode<synchronous>, transform_indices = @transform_1, window_bounds = array<i64: 16, 32>}, {pipeline_mode = #tpu.pipeline_mode<synchronous>, transform_indices = @transform_2, window_bounds = array<i64: 32, 32>}, {pipeline_mode = #tpu.pipeline_mode<synchronous>, transform_indices = @transform_3, window_bounds = array<i64: 1, 32>}, {pipeline_mode = #tpu.pipeline_mode<synchronous>, transform_indices = @transform_4, window_bounds = array<i64: 2, 32>}, {pipeline_mode = #tpu.pipeline_mode<synchronous>, transform_indices = @transform_5, window_bounds = array<i64: 1, 1>}, {transform_indices = @transform_6, window_bounds = array<i64: 8, 1>}]} {
    %c0 = arith.constant 0 : index
    %c0_0 = arith.constant 0 : index
    %0 = vector.load %arg1[%c0, %c0_0] : memref<8x16xf32, #tpu.memory_space<vmem>>, vector<8x16xf32>
    %c0_1 = arith.constant 0 : index
    %c0_2 = arith.constant 0 : index
    %1 = vector.load %arg2[%c0_1, %c0_2] : memref<16x32xf32, #tpu.memory_space<vmem>>, vector<16x32xf32>
    %cst = arith.constant dense<0.000000e+00> : vector<8x32xf32>
    %2 = tpu.matmul %0, %1, %cst {dimension_numbers = #tpu.dot_dimension_numbers<[1], [0], [0], [1], [0, 0, 1, 1], [], []>} : vector<8x16xf32>, vector<16x32xf32>, vector<8x32xf32> -> vector<8x32xf32>
    %c0_3 = arith.constant 0 : index
    %c0_4 = arith.constant 0 : index
    %3 = vector.load %arg5[%c0_3, %c0_4] : memref<2x32xf32, #tpu.memory_space<vmem>>, vector<1x32xf32>
    %4 = vector.broadcast %3 : vector<1x32xf32> to vector<8x32xf32>
    %5 = arith.addf %2, %4 : vector<8x32xf32>
    %cst_5 = arith.constant 0.000000e+00 : f32
    %6 = vector.broadcast %cst_5 : f32 to vector<8x32xf32>
    %7 = arith.maximumf %5, %6 : vector<8x32xf32>
    %c0_6 = arith.constant 0 : index
    %c0_7 = arith.constant 0 : index
    %8 = vector.load %arg3[%c0_6, %c0_7] : memref<32x32xf32, #tpu.memory_space<vmem>>, vector<32x32xf32>
    %cst_8 = arith.constant dense<0.000000e+00> : vector<8x32xf32>
    %9 = tpu.matmul %7, %8, %cst_8 {dimension_numbers = #tpu.dot_dimension_numbers<[1], [0], [0], [1], [0, 0, 1, 1], [], []>} : vector<8x32xf32>, vector<32x32xf32>, vector<8x32xf32> -> vector<8x32xf32>
    %c1 = arith.constant 1 : index
    %c0_9 = arith.constant 0 : index
    %10 = vector.load %arg5[%c1, %c0_9] : memref<2x32xf32, #tpu.memory_space<vmem>>, vector<1x32xf32>
    %11 = vector.broadcast %10 : vector<1x32xf32> to vector<8x32xf32>
    %12 = arith.addf %9, %11 : vector<8x32xf32>
    %cst_10 = arith.constant 0.000000e+00 : f32
    %13 = vector.broadcast %cst_10 : f32 to vector<8x32xf32>
    %14 = arith.maximumf %12, %13 : vector<8x32xf32>
    %c0_11 = arith.constant 0 : index
    %c0_12 = arith.constant 0 : index
    %15 = vector.load %arg4[%c0_11, %c0_12] : memref<1x32xf32, #tpu.memory_space<vmem>>, vector<1x32xf32>
    %16 = vector.broadcast %15 : vector<1x32xf32> to vector<8x32xf32>
    %17 = arith.mulf %14, %16 : vector<8x32xf32>
    %cst_13 = arith.constant dense<0.000000e+00> : vector<8xf32>
    %18 = vector.multi_reduction <add>, %17, %cst_13 [1] : vector<8x32xf32> to vector<8xf32>
    %19 = vector.shape_cast %18 : vector<8xf32> to vector<8x1xf32>
    %c0_14 = arith.constant 0 : index
    %c0_15 = arith.constant 0 : index
    %20 = vector.load %arg6[%c0_14, %c0_15] : memref<1x1xf32, #tpu.memory_space<vmem>>, vector<1x1xf32>
    %21 = vector.broadcast %20 : vector<1x1xf32> to vector<8x1xf32>
    %22 = arith.addf %19, %21 : vector<8x1xf32>
    %c0_16 = arith.constant 0 : index
    %c0_17 = arith.constant 0 : index
    %23 = vector.load %arg7[%c0_16, %c0_17] : memref<8x1xf32, #tpu.memory_space<vmem>>, vector<8x1xf32>
    tpu.vector_store %arg7[%c0_16, %c0_17], %22 {strides = array<i32>} : memref<8x1xf32, #tpu.memory_space<vmem>>, vector<8x1xf32>,
    return
  }
  func.func @transform_0(%arg0: i32) -> (i32, i32) {
    %c0_i32 = arith.constant 0 : i32
    %c0_i32_0 = arith.constant 0 : i32
    return %arg0, %c0_i32 : i32, i32
  }
  func.func @transform_1(%arg0: i32) -> (i32, i32) {
    %c0_i32 = arith.constant 0 : i32
    %c0_i32_0 = arith.constant 0 : i32
    %c0_i32_1 = arith.constant 0 : i32
    return %c0_i32, %c0_i32_0 : i32, i32
  }
  func.func @transform_2(%arg0: i32) -> (i32, i32) {
    %c0_i32 = arith.constant 0 : i32
    %c0_i32_0 = arith.constant 0 : i32
    %c0_i32_1 = arith.constant 0 : i32
    return %c0_i32, %c0_i32_0 : i32, i32
  }
  func.func @transform_3(%arg0: i32) -> (i32, i32) {
    %c0_i32 = arith.constant 0 : i32
    %c0_i32_0 = arith.constant 0 : i32
    %c0_i32_1 = arith.constant 0 : i32
    return %c0_i32, %c0_i32_0 : i32, i32
  }
  func.func @transform_4(%arg0: i32) -> (i32, i32) {
    %c0_i32 = arith.constant 0 : i32
    %c0_i32_0 = arith.constant 0 : i32
    %c0_i32_1 = arith.constant 0 : i32
    return %c0_i32, %c0_i32_0 : i32, i32
  }
  func.func @transform_5(%arg0: i32) -> (i32, i32) {
    %c0_i32 = arith.constant 0 : i32
    %c0_i32_0 = arith.constant 0 : i32
    %c0_i32_1 = arith.constant 0 : i32
    return %c0_i32, %c0_i32_0 : i32, i32
  }
  func.func @transform_6(%arg0: i32) -> (i32, i32) {
    %c0_i32 = arith.constant 0 : i32
    %c0_i32_0 = arith.constant 0 : i32
    return %arg0, %c0_i32 : i32, i32
  }
}

</mosaic_0001>

<bundles_post_ra>
// kernel: tpu_custom_call.1
= control target key start
LH: loop header
LB: loop body
LE: loop exit
PB: predicated region body
PF: predicated region fallthrough
CT: control target
= control target key end

     0   :  { %s427_s0 = inlined_call_operand.hbm [shape: f32[8,16], index: 0, kind: input, shape index: {}]   ;;  %s428_s1 = inlined_call_operand.hbm [shape: f32[16,32], index: 1, kind: input, shape index: {}]   ;;  %s429_s2 = inlined_call_operand.hbm [shape: f32[32,32], index: 2, kind: input, shape index: {}]   ;;  %s430_s3 = inlined_call_operand.vmem [shape: f32[1,32], index: 3, kind: input, shape index: {}]   ;;  %s431_s4 = inlined_call_operand.vmem [shape: f32[2,32], index: 4, kind: input, shape index: {}]   ;;  %s432_s5 = inlined_call_operand.<no memory space> [shape: f32[1,1], index: 5, kind: input, shape index: {}]   ;;  %s433_s6 = inlined_call_operand.vmem [shape: f32[8,1], index: 6, kind: output, shape index: {}]  }
   0x1   :  { %v11_v0 = vstv %s432_s5 }
   0x2   :  { %12 = vst [vmem:[#allocation2] sm:$0x1] %v11_v0 }
   0x3   :  { %13 = vsyncpa [#allocation4], 0 }
   0x4   :  { %14 = vsyncpa [#allocation6], 0  ;;  %s361_s23 = smov [#allocation5]  }
   0x5   :  { %s30_s24 = sshll.u32 %s361_s23, 4  ;;  %s31_s24 = int_to_ptr.vmem [resolvable:$true] %s30_s24 }
   0x6   :  { %s305_s25 = scalar_lea.vmem %s31_s24, 256  ;;  %p310_p1 = scmp.lt.s32.totalorder %s31_s24, %s31_s24 }
   0x7   :  { %p306_p0 = scmp.ne.s32.totalorder %s31_s24, %s305_s25  ;;  %p311_p2 = scmp.lt.s32.totalorder %s305_s25, %s305_s25 }
   0x9   :  { %p312_p3 = por %p311_p2, %p310_p1 }
   0xb   :  { %p313_p4 = pnand %p312_p3, %p306_p0 }
   0xd   :  { %316 = shalt.err (!%p313_p4)
}
   0xe   :  { %s362_s26 = smov 128   ;;  %s363_s27 = smov 8  }
   0xf   :  { %36 = dma.hbm_to_vmem [thread:$0]  %s428_s1, 256, %s31_s24, [#allocation6], %s362_s26, %s362_s26, %s363_s27  }
  0x10   :  { %s364_s5 = smov [#allocation3]   ;;  %s365_s7 = smov [#allocation7]  }
  0x11   :  { %s21_s30 = sshll.u32 %s364_s5, 4  ;;  %s42_s8 = sshll.u32 %s365_s7, 4  ;;  %s22_s30 = int_to_ptr.vmem [resolvable:$true] %s21_s30  ;;  %s43_s8 = int_to_ptr.vmem [resolvable:$true] %s42_s8 }
  0x12   :  { %s325_s9 = scalar_lea.vmem %s22_s30, 128  ;;  %p330_p6 = scmp.lt.s32.totalorder %s22_s30, %s22_s30 }
  0x13   :  { %p326_p5 = scmp.ne.s32.totalorder %s22_s30, %s325_s9  ;;  %p331_p7 = scmp.lt.s32.totalorder %s325_s9, %s325_s9 }
  0x15   :  { %p332_p8 = por %p331_p7, %p330_p6 }
  0x17   :  { %p333_p9 = pnand %p332_p8, %p326_p5 }
  0x19   :  { %336 = shalt.err (!%p333_p9)
}
  0x1a   :  { %24 = dma.hbm_to_vmem [thread:$0]  %s427_s0, 128, %s22_s30, [#allocation4]  }
  0x1b   :  { %s345_s12 = scalar_lea.vmem %s43_s8, 512  ;;  %p350_p11 = scmp.lt.s32.totalorder %s43_s8, %s43_s8 }
  0x1c   :  { %p346_p10 = scmp.ne.s32.totalorder %s43_s8, %s345_s12  ;;  %p351_p12 = scmp.lt.s32.totalorder %s345_s12, %s345_s12 }
  0x1e   :  { %p352_p13 = por %p351_p12, %p350_p11 }
  0x20   :  { %p353_p0 = pnand %p352_p13, %p346_p10 }
  0x22   :  { %356 = shalt.err (!%p353_p0)
}
  0x23   :  { %48 = dma.hbm_to_vmem [thread:$0]  %s429_s2, 512, %s43_s8, [#allocation6], %s362_s26, %s362_s26, %s363_s27  }
  0x24   :  { %357 = dma.done.wait [#allocation4], 128  }
  0x25   :  { %358 = vsyncadd [#allocation4], 4294967168 }
  0x26   :  { %359 = dma.done.wait [#allocation6], 768  }
  0x27   :  { %360 = vsyncadd [#allocation6], 4294966528  ;;  %v366_v1 = vmov 0.0   ;;  %vm367_vm0 = vmmov 0   ;;  %v66_v2 = vld [vmem:[#allocation5 + $0x8] sm:$0xff]  ;;  %v65_v3 = vld [vmem:[#allocation5] sm:$0xff] }
  0x28   :  { %272 = vmatprep.subr.mxu0 %v366_v1  ;;  %276 = vmatprep.mubr.msk.f32.mxu0 %vm367_vm0, %v366_v1  ;;  %v64_v4 = vld [vmem:[#allocation3] sm:$0xff]  ;;  %vm72_vm1 = vcmask 130048   ;;  %v150_v5 = vld [vmem:[#allocation7 + $0x18] sm:$0xff]  ;;  %v149_v6 = vld [vmem:[#allocation7 + $0x10] sm:$0xff]  ;;  %vm156_vm2 = vcmask 261120   ;;  %vm250_vm3 = vcmask 7168  }
  0x29   :  { %279 = vmatprep.subr.mxu1 %v366_v1  ;;  %287 = vmatprep.mubr.msk.f32.mxu1 %vm367_vm0, %v366_v1  ;;  %v148_v7 = vld [vmem:[#allocation7 + $0x8] sm:$0xff]  ;;  %v147_v8 = vld [vmem:[#allocation7] sm:$0xff] }
  0x2a   :  { %273 = vmatpush3.msra.mxu0 %v66_v2  ;;  %280 = vmatpush3.msra.mxu1 %v150_v5  ;;  %v258_v9 = vld [vmem:[%s431_s4] ss:$0 sm:$0xff]  ;;  %v260_v14 = vld [vmem:[%s431_s4 + $0x1] ss:$0 sm:$0xff] }
  0x2b   :  { %274 = vmatprep.subr.mxu0 %v366_v1  ;;  %281 = vmatprep.subr.mxu1 %v366_v1  ;;  %v262_v18 = vld [vmem:[%s430_s3] ss:$0 sm:$0xff] }
  0x2c   :  { %275 = vmatpush3.msra.mxu0 %v65_v3  ;;  %282 = vmatpush3.msra.mxu1 %v149_v6  ;;  %v263_v22 = vld [vmem:[#allocation2] ss:$0 sm:$0xff] }
  0x2d   :  { %277 = vmatmul.mubr.msk.f32.vlgmr.msra.gmra.mxu0 %vm72_vm1, %v64_v4  ;;  %283 = vmatprep.subr.mxu1 %v366_v1 }
  0x2e   :  { %284 = vmatpush3.msra.mxu1 %v148_v7 }
  0x2f   :  { %285 = vmatprep.subr.mxu1 %v366_v1 }
  0x30   :  { %286 = vmatpush3.msra.mxu1 %v147_v8 }
  0xed   :  { %v142_v10 = vpop.f32.mrf.mxu0 }
  0xee   :  { %v143_v11 = vadd.f32 %v258_v9, %v142_v10 }
  0xef   :  { %v278_v12 = vpop.f32.mrf.mxu0 }
  0xf0   :  { %v146_v13 = vmax.f32 %v143_v11, 0.0 }
  0xf2   :  { %288 = vmatmul.mubr.msk.f32.vlgmr.msra.gmra.mxu1 %vm156_vm2, %v146_v13 }
 0x1b2   :  { %v226_v15 = vpop.f32.mrf.mxu1 }
 0x1b3   :  { %v227_v16 = vadd.f32 %v260_v14, %v226_v15 }
 0x1b4   :  { %v289_v17 = vpop.f32.mrf.mxu1 }
 0x1b5   :  { %v230_v19 = vmax.f32 %v227_v16, 0.0 }
 0x1b7   :  { %v238_v20 = vmul.f32 %v262_v18, %v230_v19 }
 0x1b9   :  { %v239_v21 = vsel %vm156_vm2, %v238_v20, 0.0 }
 0x1ba   :  { %240 = vadd.xlane.f32.xlu0 %v239_v21 }
 0x243   :  { %v241_v23 = vpop.xlane.xlu0 %240 }
 0x244   :  { %v249_v24 = vadd.f32 %v263_v22, %v241_v23 }
 0x246   :  { %251 = vst.msk [vmem:[%s433_s6] sm:$0xff] %vm250_vm3, %v249_v24 }
 0x247   :  { %256 = vsyncpa [#allocation4], 1 }
 0x248   :  { %257 = vsyncpa [#allocation6], 1 }

</bundles_post_ra>
